<compile_context>
chip_gen: v7x
topology: tpu7x:2x2x1
jax: 0.10.0
libtpu: 0.0.40
codegen_flags: <defaults>
</compile_context>

<pallas_src>
import functools

import jax
import jax.numpy as jnp
from jax.experimental import pallas as pl
from jax.experimental.pallas import tpu as pltpu

_LANE = 128
_SUBLANE = 8


def _loss_kernel(p_ref, t_ref, o_ref, acc_ref, *, dice_loss_mode: bool,
                 rows: int, block_rows: int, steps_per_split: int,
                 needs_mask: bool):
    """Grid = (split, step): axis 0 is megacore-parallel, axis 1 is the
    sequential reduction over this split's row-blocks.

    acc_ref (VMEM, f32[2, 8, 128]) — small vector accumulators:
      acc[0] = running sum (per lane/sublane slot) of pred*target
      acc[1] = running sum of (pred+target)           (dice mode)
               running sum of ceil((pred+target)/2)   (iou mode)
    The finalize step just copies the accumulator to this split's output slab;
    the tiny cross-lane reduce happens in the wrapper.
    """
    c = pl.program_id(0)   # split index (parallel axis)
    i = pl.program_id(1)   # step within split (reduction axis)

    @pl.when(i == 0)
    def _init():
        acc_ref[...] = jnp.zeros_like(acc_ref)

    p = p_ref[...]
    t = t_ref[...]

    def _accumulate(mask_limit=None):
        p32 = p.astype(jnp.float32)
        t32 = t.astype(jnp.float32)
        inter = p32 * t32
        if dice_loss_mode:
            denom = p32 + t32                      # sum(p)+sum(t) == sum(p+t)
        else:
            denom = jnp.ceil((p32 + t32) * 0.5)
        if mask_limit is not None:
            row_ids = jax.lax.broadcasted_iota(jnp.int32, inter.shape, 0)
            keep = row_ids < mask_limit
            # Select (not multiply) so NaN/Inf garbage in the unspecified rows
            # of edge blocks can never leak into the sums.
            inter = jnp.where(keep, inter, 0.0)
            denom = jnp.where(keep, denom, 0.0)
        # Sublane-group reduce: (block_rows, 128) -> (k, 8, 128), sum over k.
        # Plain VALU adds across vregs; keeps the accumulator at one (8, 128)
        # slab per quantity (no full-block RMW per step).
        acc_ref[0] += inter.reshape(block_rows // _SUBLANE, _SUBLANE, _LANE).sum(axis=0)
        acc_ref[1] += denom.reshape(block_rows // _SUBLANE, _SUBLANE, _LANE).sum(axis=0)

    if needs_mask:
        # Only possible when rows % block_rows != 0 (partial last block) or
        # the split count does not divide the step count (fully out-of-range
        # blocks, DMA-clamped in the index_map). Mask only on those steps.
        b = c * steps_per_split + i                 # global row-block index
        is_edge = (b + 1) * block_rows > rows
        @pl.when(is_edge)
        def _():
            _accumulate(mask_limit=rows - b * block_rows)
        @pl.when(jnp.logical_not(is_edge))
        def _():
            _accumulate()
    else:
        _accumulate()

    @pl.when(i == steps_per_split - 1)
    def _finalize():
        o_ref[0] = acc_ref[...]


def my_loss(pred, target, *, dice_loss_mode: bool = True, smooth: float = 0.01,
            block_rows: int = 4096):
    """Pallas equivalent of MyLoss.forward. Returns a f32 scalar."""
    assert pred.shape == target.shape, "pred/target must have identical shapes"
    n = pred.size
    p_flat = pred.reshape(-1)
    t_flat = target.reshape(-1)

    # 8x128-aligned bulk goes through the kernel; the <=1023-element remainder
    # is folded in below with plain jnp ops (avoids an O(n) padded copy).
    rows = (n // (_SUBLANE * _LANE)) * _SUBLANE
    bulk = rows * _LANE

    if rows > 0:
        if rows <= block_rows:
            block_rows = rows                               # full extent
        else:
            block_rows = max(_SUBLANE, (block_rows // _SUBLANE) * _SUBLANE)
        total_steps = pl.cdiv(rows, block_rows)
        num_splits = 2 if total_steps >= 2 else 1           # megacore split (v7x)
        steps_per_split = pl.cdiv(total_steps, num_splits)
        needs_mask = (rows % block_rows != 0) or (num_splits * steps_per_split != total_steps)

        def in_map(c, i):
            b = c * steps_per_split + i
            # Clamp so DMAs for fully out-of-range blocks stay in bounds; their
            # contribution is masked to zero inside the kernel.
            return (jnp.minimum(b, total_steps - 1), 0)

        p2 = p_flat[:bulk].reshape(rows, _LANE)
        t2 = t_flat[:bulk].reshape(rows, _LANE)

        kern = functools.partial(_loss_kernel,
                                 dice_loss_mode=bool(dice_loss_mode),
                                 rows=rows,
                                 block_rows=block_rows,
                                 steps_per_split=steps_per_split,
                                 needs_mask=needs_mask)

        itemsize = jnp.dtype(pred.dtype).itemsize + jnp.dtype(target.dtype).itemsize
        cost = pl.CostEstimate(
            flops=3 * bulk, transcendentals=0,
            bytes_accessed=bulk * itemsize + num_splits * 2 * _SUBLANE * _LANE * 4)

        partials = pl.pallas_call(
            kern,
            out_shape=jax.ShapeDtypeStruct((num_splits, 2, _SUBLANE, _LANE), jnp.float32),
            grid_spec=pltpu.PrefetchScalarGridSpec(
                num_scalar_prefetch=0,
                grid=(num_splits, steps_per_split),
                in_specs=[
                    pl.BlockSpec((block_rows, _LANE), in_map),
                    pl.BlockSpec((block_rows, _LANE), in_map),
                ],
                out_specs=pl.BlockSpec((1, 2, _SUBLANE, _LANE),
                                       lambda c, i: (c, 0, 0, 0)),
                scratch_shapes=[pltpu.VMEM((2, _SUBLANE, _LANE), jnp.float32)],
            ),
            compiler_params=pltpu.CompilerParams(
                dimension_semantics=("parallel", "arbitrary")),
            cost_estimate=cost,
        )(p2, t2)

        inter = jnp.sum(partials[:, 0])
        denom = jnp.sum(partials[:, 1])
    else:
        inter = jnp.zeros((), jnp.float32)
        denom = jnp.zeros((), jnp.float32)

    if bulk < n:
        # Tiny unaligned remainder (< 1024 elements): plain jnp, negligible.
        p_tail = p_flat[bulk:].astype(jnp.float32)
        t_tail = t_flat[bulk:].astype(jnp.float32)
        inter = inter + jnp.sum(p_tail * t_tail)
        if dice_loss_mode:
            denom = denom + jnp.sum(p_tail) + jnp.sum(t_tail)
        else:
            denom = denom + jnp.sum(jnp.ceil((p_tail + t_tail) * 0.5))

    smooth = jnp.float32(smooth)
    if dice_loss_mode:
        return -(2.0 * inter + smooth) / (denom + smooth)
    return -(inter + smooth) / (denom + smooth)


def _reference(pred, target, dice_loss_mode=True, smooth=0.01):
    p = pred.astype(jnp.float32).reshape(-1)
    t = target.astype(jnp.float32).reshape(-1)
    if dice_loss_mode:
        inter = jnp.dot(p, t)
        sum_two = jnp.sum(p) + jnp.sum(t)
        return -(2.0 * inter + smooth) / (sum_two + smooth)
    inter = jnp.sum(p * t)
    union = jnp.sum(jnp.ceil((p + t) / 2.0))
    return -(inter + smooth) / (union + smooth)


if __name__ == "__main__":
    # MyLoss has no learnable parameters; inputs are [batch, in_channel, H, W].
    key = jax.random.PRNGKey(0)
    k1, k2, k3, k4, k5, k6 = jax.random.split(key, 6)

    B, C, H, W = 2, 4, 16, 16
    pred = jax.nn.sigmoid(jax.random.normal(k1, (B, C, H, W), dtype=jnp.float32))
    target = (jax.random.uniform(k2, (B, C, H, W)) > 0.5).astype(jnp.float32)

    # Dice mode (default)
    dice = my_loss(pred, target, dice_loss_mode=True, smooth=0.01)
    jax.block_until_ready(dice)
    dice_ref = _reference(pred, target, dice_loss_mode=True, smooth=0.01)
    assert jnp.allclose(dice, dice_ref, rtol=1e-5, atol=1e-5), (dice, dice_ref)

    # IOU mode
    iou = my_loss(pred, target, dice_loss_mode=False, smooth=0.01)
    jax.block_until_ready(iou)
    iou_ref = _reference(pred, target, dice_loss_mode=False, smooth=0.01)
    assert jnp.allclose(iou, iou_ref, rtol=1e-5, atol=1e-5), (iou, iou_ref)

    # Ragged numel (not a multiple of 1024): tail folded in by the wrapper.
    pred_r = jax.nn.sigmoid(jax.random.normal(k3, (2, 3, 15, 17), dtype=jnp.float32))
    target_r = (jax.random.uniform(k4, (2, 3, 15, 17)) > 0.5).astype(jnp.float32)
    dice_r = my_loss(pred_r, target_r, dice_loss_mode=True, smooth=0.01)
    jax.block_until_ready(dice_r)
    dice_r_ref = _reference(pred_r, target_r, dice_loss_mode=True, smooth=0.01)
    assert jnp.allclose(dice_r, dice_r_ref, rtol=1e-5, atol=1e-5), (dice_r, dice_r_ref)

    # Forced multi-step grid with the 2-way split, a partial edge block and a
    # fully out-of-range (clamped + masked) block: rows=56, block_rows=24 ->
    # total_steps=3, num_splits=2, steps_per_split=2.
    pred_m = jax.nn.sigmoid(jax.random.normal(k5, (2, 3, 33, 37), dtype=jnp.float32))
    target_m = (jax.random.uniform(k6, (2, 3, 33, 37)) > 0.5).astype(jnp.float32)
    for mode in (True, False):
        got = my_loss(pred_m, target_m, dice_loss_mode=mode, smooth=0.01, block_rows=24)
        jax.block_until_ready(got)
        want = _reference(pred_m, target_m, dice_loss_mode=mode, smooth=0.01)
        assert jnp.allclose(got, want, rtol=1e-5, atol=1e-5), (mode, got, want)

    # bf16 inputs (kernel math in f32) against a bf16-input f32 reference.
    dice_bf = my_loss(pred.astype(jnp.bfloat16), target.astype(jnp.bfloat16))
    jax.block_until_ready(dice_bf)
    dice_bf_ref = _reference(pred.astype(jnp.bfloat16), target.astype(jnp.bfloat16))
    assert jnp.allclose(dice_bf, dice_bf_ref, rtol=1e-4, atol=1e-4), (dice_bf, dice_bf_ref)

    print("KERNEL_OK")
</pallas_src>

<mosaic_0001>
module attributes {stable_mosaic.version = 11 : i64} {
  func.func @_loss_kernel(%arg0: i32, %arg1: i32, %arg2: memref<16x128xf32, #tpu.memory_space<vmem>>, %arg3: memref<16x128xf32, #tpu.memory_space<vmem>>, %arg4: memref<1x2x8x128xf32, #tpu.memory_space<vmem>>, %arg5: memref<2x8x128xf32, #tpu.memory_space<vmem>>) attributes {dimension_semantics = [#tpu.dimension_semantics<parallel>, #tpu.dimension_semantics<arbitrary>], iteration_bounds = array<i64: 1, 1>, scalar_prefetch = 0 : i64, scratch_operands = 1 : i64, tpu.core_type = #tpu.core_type<tc>, window_params = [{transform_indices = @transform_0, window_bounds = array<i64: 16, 128>}, {transform_indices = @transform_1, window_bounds = array<i64: 16, 128>}, {transform_indices = @transform_2, window_bounds = array<i64: 1, 2, 8, 128>}]} {
    %c0_i32 = arith.constant 0 : i32
    %0 = arith.cmpi eq, %arg1, %c0_i32 : i32
    %1 = arith.extui %0 : i1 to i32
    %c0_i32_0 = arith.constant 0 : i32
    %2 = arith.cmpi ne, %1, %c0_i32_0 : i32
    scf.if %2 {
      %cst_18 = arith.constant 0.000000e+00 : f32
      %26 = vector.broadcast %cst_18 : f32 to vector<2x8x128xf32>
      %c0_19 = arith.constant 0 : index
      %c0_20 = arith.constant 0 : index
      %c0_21 = arith.constant 0 : index
      %27 = vector.load %arg5[%c0_19, %c0_20, %c0_21] : memref<2x8x128xf32, #tpu.memory_space<vmem>>, vector<2x8x128xf32>
      tpu.vector_store %arg5[%c0_19, %c0_20, %c0_21], %26 {strides = array<i32>} : memref<2x8x128xf32, #tpu.memory_space<vmem>>, vector<2x8x128xf32>,
    } else {
    }
    %c0 = arith.constant 0 : index
    %c0_1 = arith.constant 0 : index
    %3 = vector.load %arg2[%c0, %c0_1] : memref<16x128xf32, #tpu.memory_space<vmem>>, vector<16x128xf32>
    %c0_2 = arith.constant 0 : index
    %c0_3 = arith.constant 0 : index
    %4 = vector.load %arg3[%c0_2, %c0_3] : memref<16x128xf32, #tpu.memory_space<vmem>>, vector<16x128xf32>
    %5 = arith.mulf %3, %4 : vector<16x128xf32>
    %6 = arith.addf %3, %4 : vector<16x128xf32>
    %c0_4 = arith.constant 0 : index
    %c0_5 = arith.constant 0 : index
    %c0_6 = arith.constant 0 : index
    %7 = vector.load %arg5[%c0_4, %c0_5, %c0_6] : memref<2x8x128xf32, #tpu.memory_space<vmem>>, vector<1x8x128xf32>
    %8 = vector.shape_cast %7 : vector<1x8x128xf32> to vector<8x128xf32>
    %9 = vector.shape_cast %5 : vector<16x128xf32> to vector<2x8x128xf32>
    %cst = arith.constant dense<0.000000e+00> : vector<8x128xf32>
    %10 = vector.multi_reduction <add>, %9, %cst [0] : vector<2x8x128xf32> to vector<8x128xf32>
    %11 = arith.addf %8, %10 : vector<8x128xf32>
    %c0_7 = arith.constant 0 : index
    %c0_8 = arith.constant 0 : index
    %c0_9 = arith.constant 0 : index
    %12 = vector.load %arg5[%c0_7, %c0_8, %c0_9] : memref<2x8x128xf32, #tpu.memory_space<vmem>>, vector<1x8x128xf32>
    %13 = vector.shape_cast %12 : vector<1x8x128xf32> to vector<8x128xf32>
    %14 = vector.shape_cast %11 : vector<8x128xf32> to vector<1x8x128xf32>
    tpu.vector_store %arg5[%c0_7, %c0_8, %c0_9], %14 {strides = array<i32>} : memref<2x8x128xf32, #tpu.memory_space<vmem>>, vector<1x8x128xf32>,
    %c1 = arith.constant 1 : index
    %c0_10 = arith.constant 0 : index
    %c0_11 = arith.constant 0 : index
    %15 = vector.load %arg5[%c1, %c0_10, %c0_11] : memref<2x8x128xf32, #tpu.memory_space<vmem>>, vector<1x8x128xf32>
    %16 = vector.shape_cast %15 : vector<1x8x128xf32> to vector<8x128xf32>
    %17 = vector.shape_cast %6 : vector<16x128xf32> to vector<2x8x128xf32>
    %cst_12 = arith.constant dense<0.000000e+00> : vector<8x128xf32>
    %18 = vector.multi_reduction <add>, %17, %cst_12 [0] : vector<2x8x128xf32> to vector<8x128xf32>
    %19 = arith.addf %16, %18 : vector<8x128xf32>
    %c1_13 = arith.constant 1 : index
    %c0_14 = arith.constant 0 : index
    %c0_15 = arith.constant 0 : index
    %20 = vector.load %arg5[%c1_13, %c0_14, %c0_15] : memref<2x8x128xf32, #tpu.memory_space<vmem>>, vector<1x8x128xf32>
    %21 = vector.shape_cast %20 : vector<1x8x128xf32> to vector<8x128xf32>
    %22 = vector.shape_cast %19 : vector<8x128xf32> to vector<1x8x128xf32>
    tpu.vector_store %arg5[%c1_13, %c0_14, %c0_15], %22 {strides = array<i32>} : memref<2x8x128xf32, #tpu.memory_space<vmem>>, vector<1x8x128xf32>,
    %c0_i32_16 = arith.constant 0 : i32
    %23 = arith.cmpi eq, %arg1, %c0_i32_16 : i32
    %24 = arith.extui %23 : i1 to i32
    %c0_i32_17 = arith.constant 0 : i32
    %25 = arith.cmpi ne, %24, %c0_i32_17 : i32
    scf.if %25 {
      %c0_18 = arith.constant 0 : index
      %c0_19 = arith.constant 0 : index
      %c0_20 = arith.constant 0 : index
      %26 = vector.load %arg5[%c0_18, %c0_19, %c0_20] : memref<2x8x128xf32, #tpu.memory_space<vmem>>, vector<2x8x128xf32>
      %c0_21 = arith.constant 0 : index
      %c0_22 = arith.constant 0 : index
      %c0_23 = arith.constant 0 : index
      %c0_24 = arith.constant 0 : index
      %27 = vector.load %arg4[%c0_21, %c0_22, %c0_23, %c0_24] : memref<1x2x8x128xf32, #tpu.memory_space<vmem>>, vector<1x2x8x128xf32>
      %28 = vector.shape_cast %27 : vector<1x2x8x128xf32> to vector<2x8x128xf32>
      %29 = vector.shape_cast %26 : vector<2x8x128xf32> to vector<1x2x8x128xf32>
      tpu.vector_store %arg4[%c0_21, %c0_22, %c0_23, %c0_24], %29 {strides = array<i32>} : memref<1x2x8x128xf32, #tpu.memory_space<vmem>>, vector<1x2x8x128xf32>,
    } else {
    }
    return
  }
  func.func @transform_0(%arg0: i32, %arg1: i32) -> (i32, i32) {
    %c1_i32 = arith.constant 1 : i32
    %0 = arith.muli %arg0, %c1_i32 : i32
    %1 = arith.addi %0, %arg1 : i32
    %c0_i32 = arith.constant 0 : i32
    %2 = arith.minsi %1, %c0_i32 : i32
    %c0_i32_0 = arith.constant 0 : i32
    %c0_i32_1 = arith.constant 0 : i32
    return %2, %c0_i32_0 : i32, i32
  }
  func.func @transform_1(%arg0: i32, %arg1: i32) -> (i32, i32) {
    %c1_i32 = arith.constant 1 : i32
    %0 = arith.muli %arg0, %c1_i32 : i32
    %1 = arith.addi %0, %arg1 : i32
    %c0_i32 = arith.constant 0 : i32
    %2 = arith.minsi %1, %c0_i32 : i32
    %c0_i32_0 = arith.constant 0 : i32
    %c0_i32_1 = arith.constant 0 : i32
    return %2, %c0_i32_0 : i32, i32
  }
  func.func @transform_2(%arg0: i32, %arg1: i32) -> (i32, i32, i32, i32) {
    %c0_i32 = arith.constant 0 : i32
    %c0_i32_0 = arith.constant 0 : i32
    %c0_i32_1 = arith.constant 0 : i32
    %c0_i32_2 = arith.constant 0 : i32
    return %arg0, %c0_i32, %c0_i32_0, %c0_i32_1 : i32, i32, i32, i32
  }
}

</mosaic_0001>

<bundles_post_ra>
// kernel: tpu_custom_call.1
= control target key start
LH: loop header
LB: loop body
LE: loop exit
PB: predicated region body
PF: predicated region fallthrough
CT: control target
= control target key end

     0   :  { %7 = vsyncpa [#allocation4], 0  ;;  %s254_s0 = inlined_call_operand.hbm [shape: f32[16,128], index: 0, kind: input, shape index: {}]   ;;  %s255_s1 = inlined_call_operand.hbm [shape: f32[16,128], index: 1, kind: input, shape index: {}]   ;;  %s256_s2 = inlined_call_operand.hbm [shape: f32[1,2,8,128], index: 2, kind: output, shape index: {}]  }
   0x1   :  { %8 = vsyncpa [#allocation7], 0 }
   0x2   :  { %9 = vsyncpa [#allocation5], 0  ;;  %s189_s9 = smov [#allocation3]   ;;  %s117_s13 = scalar_lea.hbm %s254_s0, 256 }
   0x3   :  { %s21_s10 = sshll.u32 %s189_s9, 4  ;;  %p118_p0 = scmp.ne.s32.totalorder %s254_s0, %s117_s13  ;;  %s22_s10 = int_to_ptr.vmem [resolvable:$true] %s21_s10 }
   0x4   :  { %p121_p1 = scmp.lt.u32.totalorder %s117_s13, %s254_s0 }
   0x6   :  { %p123_p2 = pnand %p121_p1, %p118_p0 }
   0x8   :  { %126 = shalt.err (!%p123_p2)
}
   0x9   :  { %s127_s18 = scalar_lea.vmem %s22_s10, 256  ;;  %p132_p4 = scmp.lt.s32.totalorder %s22_s10, %s22_s10 }
   0xa   :  { %p128_p3 = scmp.ne.s32.totalorder %s22_s10, %s127_s18  ;;  %p133_p5 = scmp.lt.s32.totalorder %s127_s18, %s127_s18 }
   0xc   :  { %p134_p6 = por %p133_p5, %p132_p4 }
   0xe   :  { %p135_p7 = pnand %p134_p6, %p128_p3 }
  0x10   :  { %138 = shalt.err (!%p135_p7)
}
  0x11   :  { %s190_s19 = smov 128   ;;  %s191_s20 = smov 8  }
  0x12   :  { %27 = dma.hbm_to_vmem [thread:$0]  %s254_s0, 256, %s22_s10, [#allocation4], %s190_s19, %s190_s19, %s191_s20  }
  0x13   :  { %s192_s23 = smov [#allocation6]   ;;  %s139_s27 = scalar_lea.hbm %s255_s1, 256 }
  0x14   :  { %s39_s24 = sshll.u32 %s192_s23, 4  ;;  %p140_p8 = scmp.ne.s32.totalorder %s255_s1, %s139_s27  ;;  %s40_s24 = int_to_ptr.vmem [resolvable:$true] %s39_s24 }
  0x15   :  { %p143_p9 = scmp.lt.u32.totalorder %s139_s27, %s255_s1 }
  0x17   :  { %p145_p10 = pnand %p143_p9, %p140_p8 }
  0x19   :  { %148 = shalt.err (!%p145_p10)
}
  0x1a   :  { %s149_s4 = scalar_lea.vmem %s40_s24, 256  ;;  %p154_p12 = scmp.lt.s32.totalorder %s40_s24, %s40_s24 }
  0x1b   :  { %p150_p11 = scmp.ne.s32.totalorder %s40_s24, %s149_s4  ;;  %p155_p13 = scmp.lt.s32.totalorder %s149_s4, %s149_s4 }
  0x1d   :  { %p156_p0 = por %p155_p13, %p154_p12 }
  0x1f   :  { %p157_p1 = pnand %p156_p0, %p150_p11 }
  0x21   :  { %160 = shalt.err (!%p157_p1)
}
  0x22   :  { %45 = dma.hbm_to_vmem [thread:$0]  %s255_s1, 256, %s40_s24, [#allocation7], %s190_s19, %s190_s19, %s191_s20  }
  0x23   :  { %183 = dma.done.wait [#allocation4], 256  }
  0x24   :  { %184 = vsyncadd [#allocation4], 4294967040 }
  0x25   :  { %185 = dma.done.wait [#allocation7], 256  }
  0x26   :  { %186 = vsyncadd [#allocation7], 4294967040  ;;  %v66_v0 = vld [vmem:[#allocation3] sm:$0xff]  ;;  %v67_v1 = vld [vmem:[#allocation3 + $0x8] sm:$0xff]  ;;  %s193_s6 = smov [#allocation8]  }
  0x27   :  { %v68_v2 = vld [vmem:[#allocation6] sm:$0xff]  ;;  %v69_v3 = vld [vmem:[#allocation6 + $0x8] sm:$0xff]  ;;  %s95_s7 = sshll.u32 %s193_s6, 4  ;;  %s96_s7 = int_to_ptr.vmem [resolvable:$true] %s95_s7 }
  0x28   :  { %v70_v4 = vmul.f32 %v68_v2, %v66_v0  ;;  %v72_v5 = vadd.f32 %v68_v2, %v66_v0  ;;  %v71_v6 = vmul.f32 %v69_v3, %v67_v1  ;;  %v73_v7 = vadd.f32 %v69_v3, %v67_v1  ;;  %s161_s1 = scalar_lea.vmem %s96_s7, 256  ;;  %p166_p3 = scmp.lt.s32.totalorder %s96_s7, %s96_s7 }
  0x29   :  { %p162_p2 = scmp.ne.s32.totalorder %s96_s7, %s161_s1  ;;  %p167_p4 = scmp.lt.s32.totalorder %s161_s1, %s161_s1 }
  0x2a   :  { %v75_v8 = vadd.f32 %v71_v6, %v70_v4  ;;  %v80_v9 = vadd.f32 %v73_v7, %v72_v5 }
  0x2b   :  { %p168_p5 = por %p167_p4, %p166_p3 }
  0x2c   :  { %88 = vst [vmem:[#allocation8] sm:$0xff] %v75_v8  ;;  %89 = vst [vmem:[#allocation8 + $0x8] sm:$0xff] %v80_v9 }
  0x2d   :  { %p169_p6 = pnand %p168_p5, %p162_p2 }
  0x2f   :  { %172 = shalt.err (!%p169_p6)
}
  0x30   :  { %s173_s10 = scalar_lea.hbm %s256_s2, 256 }
  0x31   :  { %p174_p7 = scmp.ne.s32.totalorder %s256_s2, %s173_s10  ;;  %p177_p8 = scmp.lt.u32.totalorder %s173_s10, %s256_s2 }
  0x33   :  { %p179_p9 = pnand %p177_p8, %p174_p7 }
  0x35   :  { %182 = shalt.err (!%p179_p9)
}
  0x36   :  { %101 = dma.vmem_to_hbm [thread:$0]  %s96_s7, 256, %s256_s2, [#allocation5], %s190_s19, %s190_s19, %s191_s20  }
  0x37   :  { %187 = dma.done.wait [#allocation5], 256  }
  0x38   :  { %188 = vsyncadd [#allocation5], 4294967040 }
  0x39   :  { %105 = vsyncpa [#allocation4], 1 }
  0x3a   :  { %106 = vsyncpa [#allocation7], 1 }
  0x3b   :  { %107 = vsyncpa [#allocation5], 1 }

</bundles_post_ra>
